<compile_context>
chip_gen: v5e
topology: v5e:2x2
jax: 0.10.0
libtpu: 0.0.40
codegen_flags: <defaults>
</compile_context>

<pallas_src>
import jax
import jax.numpy as jnp
from jax.experimental import pallas as pl
from jax.experimental.pallas import tpu as pltpu

_LANE = 128          # lane width: pad the rating dim to a multiple of this
_NEG_BIG = -1e30     # bias for padded rating lanes -> exp() underflows to 0


def _decoder_kernel(uid_ref, item_ref, user_ref, wi_ref, wu_ref, b_ref, out_ref):
    """One batch element per grid step.

    uid_ref  : SMEM scalar-prefetch, (B,) int32 (used only by the index_maps)
    item_ref : (1, 1, E)   this step's flattened combined_item_emb
    user_ref : (1, 1, E)   this step's user embedding row (gathered via index_map)
    wi_ref   : (E, Rp)     W.T rows [0:E]   (item half), lane-padded
    wu_ref   : (E, Rp)     W.T rows [E:2E]  (user half), lane-padded
    b_ref    : (1, Rp)     bias, padded lanes = -1e30
    out_ref  : (1, 1, Rp)  softmax output (padded lanes come out as 0)
    """
    item = item_ref[0]                                  # (1, E)
    user = user_ref[0]                                  # (1, E)

    # cat([item, user], -1) @ W.T + b  ==  item @ Wi + user @ Wu + b
    logits = (
        jnp.dot(item, wi_ref[...], preferred_element_type=jnp.float32)
        + jnp.dot(user, wu_ref[...], preferred_element_type=jnp.float32)
        + b_ref[...]
    )                                                   # (1, Rp)

    # numerically-stable softmax over the (lane-padded) rating axis
    m = jnp.max(logits, axis=-1, keepdims=True)
    e = jnp.exp(logits - m)
    # NOTE: pl.reciprocal(..., approx=True) would move the divide to the EUP,
    # but its ~1e-3 relative error can break the 1e-5 reference check; keep exact.
    out_ref[0] = e / jnp.sum(e, axis=-1, keepdims=True)


def make_decoder_params(user_embeddings, w, b):
    """One-time parameter prep (hoisted out of the per-call hot path)."""
    user_num, emb_dim = user_embeddings.shape
    rating_range = b.shape[0]
    rp = pl.cdiv(rating_range, _LANE) * _LANE           # lane-padded rating dim

    wt = jnp.transpose(w).astype(jnp.float32)           # (2E, R)
    wi = jnp.zeros((emb_dim, rp), jnp.float32).at[:, :rating_range].set(wt[:emb_dim])
    wu = jnp.zeros((emb_dim, rp), jnp.float32).at[:, :rating_range].set(wt[emb_dim:])
    bp = jnp.full((1, rp), _NEG_BIG, jnp.float32).at[0, :rating_range].set(
        b.astype(jnp.float32))
    # (user_num, 1, E) so the gather block's trailing dims equal the array's.
    utab = user_embeddings.astype(jnp.float32).reshape(user_num, 1, emb_dim)

    return dict(utab=utab, wi=wi, wu=wu, b=bp,
                user_num=user_num, emb_dim=emb_dim,
                rating_range=rating_range, rp=rp)


def struct_sem_emb_decoder_batch(params, item_embs, user_ids):
    """Batched forward: item_embs (B, E)-reshapeable, user_ids (B,) -> (B, R)."""
    emb_dim = params["emb_dim"]
    rp = params["rp"]
    rating_range = params["rating_range"]
    user_num = params["user_num"]

    user_ids = jnp.asarray(user_ids, dtype=jnp.int32).reshape(-1)
    batch = user_ids.shape[0]
    items = item_embs.reshape(batch, 1, emb_dim).astype(jnp.float32)
    # Bounds-safety: OOB gathers are not checked on TPU -> clamp.
    uids = jnp.clip(user_ids, 0, user_num - 1)

    out = pl.pallas_call(
        _decoder_kernel,
        out_shape=jax.ShapeDtypeStruct((batch, 1, rp), jnp.float32),
        grid_spec=pltpu.PrefetchScalarGridSpec(
            num_scalar_prefetch=1,                      # uid vector -> SMEM
            grid=(batch,),
            in_specs=[
                # item row for this batch step
                pl.BlockSpec((1, 1, emb_dim), lambda i, uid: (i, 0, 0)),
                # user row gathered straight from HBM via the prefetched uid
                pl.BlockSpec((1, 1, emb_dim), lambda i, uid: (uid[i], 0, 0)),
                # weights / bias: same block every step (no re-DMA)
                # TODO(synk): pipeline_mode=pl.Buffered(1) would drop their
                # double buffers; skipped to stay on the well-trodden path.
                pl.BlockSpec((emb_dim, rp), lambda i, uid: (0, 0)),
                pl.BlockSpec((emb_dim, rp), lambda i, uid: (0, 0)),
                pl.BlockSpec((1, rp), lambda i, uid: (0, 0)),
            ],
            out_specs=pl.BlockSpec((1, 1, rp), lambda i, uid: (i, 0, 0)),
        ),
        compiler_params=pltpu.CompilerParams(
            dimension_semantics=("parallel",)),
    )(uids, items, params["utab"], params["wi"], params["wu"], params["b"])

    return out.reshape(batch, rp)[:, :rating_range]


def struct_sem_emb_decoder(params, combined_item_emb, user_id):
    """Module-equivalent forward: single (item, user_id) -> (1, rating_range)."""
    item = combined_item_emb.reshape(1, params["emb_dim"])
    uid = jnp.asarray([user_id], dtype=jnp.int32)
    return struct_sem_emb_decoder_batch(params, item, uid)


if __name__ == "__main__":
    # Small, forward-consistent sizes.
    emb_dim = 32
    hidden_dim = 64        # unused by forward
    item_num = 10          # unused by forward
    user_num = 8
    vocab_size = 100       # unused by forward
    rating_range = 5

    key = jax.random.PRNGKey(0)
    k_emb, k_w, k_b, k_item, k_batch = jax.random.split(key, 5)

    # Deterministic parameter init (shapes from __init__):
    #   nn.Embedding(user_num, emb_dim)  ~ N(0, 1)
    #   nn.Linear(2*emb_dim, rating_range): U(-1/sqrt(fan_in), 1/sqrt(fan_in))
    user_embeddings = jax.random.normal(k_emb, (user_num, emb_dim), jnp.float32)
    bound = float(1.0 / (2 * emb_dim) ** 0.5)
    w = jax.random.uniform(k_w, (rating_range, 2 * emb_dim), jnp.float32, -bound, bound)
    b = jax.random.uniform(k_b, (rating_range,), jnp.float32, -bound, bound)

    # One-time parameter prep (transpose / cast / pad hoisted out of the call).
    params = make_decoder_params(user_embeddings, w, b)

    # ---- single-example forward (PyTorch layout: combined_item_emb (E, 1, 1)) ----
    combined_item_emb = jax.random.normal(k_item, (emb_dim, 1, 1), jnp.float32)
    user_id = 3
    out1 = jax.block_until_ready(
        struct_sem_emb_decoder(params, combined_item_emb, user_id))

    x1 = jnp.concatenate(
        [combined_item_emb.reshape(1, emb_dim),
         user_embeddings[user_id:user_id + 1]], axis=1)
    ref1 = jax.nn.softmax(x1 @ w.T + b, axis=-1)
    assert out1.shape == (1, rating_range), out1.shape
    assert jnp.allclose(out1, ref1, atol=1e-5), (out1, ref1)

    # ---- small batched call (amortizes per-call overhead) ----
    batch = 4
    item_batch = jax.random.normal(k_batch, (batch, emb_dim), jnp.float32)
    uid_batch = jnp.array([0, 3, 5, 7], dtype=jnp.int32)
    outb = jax.block_until_ready(
        struct_sem_emb_decoder_batch(params, item_batch, uid_batch))

    xb = jnp.concatenate([item_batch, user_embeddings[uid_batch]], axis=1)
    refb = jax.nn.softmax(xb @ w.T + b, axis=-1)
    assert outb.shape == (batch, rating_range), outb.shape
    assert jnp.allclose(outb, refb, atol=1e-5), (outb, refb)

    print("KERNEL_OK")
</pallas_src>

<mosaic_0001>
module attributes {stable_mosaic.version = 11 : i64} {
  func.func @_decoder_kernel(%arg0: i32, %arg1: memref<1xi32, #tpu.memory_space<smem>>, %arg2: memref<1x1x32xf32, #tpu.memory_space<vmem>>, %arg3: memref<1x1x32xf32, #tpu.memory_space<vmem>>, %arg4: memref<32x128xf32, #tpu.memory_space<vmem>>, %arg5: memref<32x128xf32, #tpu.memory_space<vmem>>, %arg6: memref<1x128xf32, #tpu.memory_space<vmem>>, %arg7: memref<1x1x128xf32, #tpu.memory_space<vmem>>) attributes {dimension_semantics = [#tpu.dimension_semantics<parallel>], iteration_bounds = array<i64: 1>, scalar_prefetch = 1 : i64, scratch_operands = 0 : i64, tpu.core_type = #tpu.core_type<tc>, window_params = [{transform_indices = @transform_0, window_bounds = array<i64: 1, 1, 32>}, {transform_indices = @transform_1, window_bounds = array<i64: 1, 1, 32>}, {pipeline_mode = #tpu.pipeline_mode<synchronous>, transform_indices = @transform_2, window_bounds = array<i64: 32, 128>}, {pipeline_mode = #tpu.pipeline_mode<synchronous>, transform_indices = @transform_3, window_bounds = array<i64: 32, 128>}, {pipeline_mode = #tpu.pipeline_mode<synchronous>, transform_indices = @transform_4, window_bounds = array<i64: 1, 128>}, {transform_indices = @transform_5, window_bounds = array<i64: 1, 1, 128>}]} {
    %c0 = arith.constant 0 : index
    %c0_0 = arith.constant 0 : index
    %c0_1 = arith.constant 0 : index
    %0 = vector.load %arg2[%c0, %c0_0, %c0_1] : memref<1x1x32xf32, #tpu.memory_space<vmem>>, vector<1x1x32xf32>
    %1 = vector.shape_cast %0 : vector<1x1x32xf32> to vector<1x32xf32>
    %c0_2 = arith.constant 0 : index
    %c0_3 = arith.constant 0 : index
    %c0_4 = arith.constant 0 : index
    %2 = vector.load %arg3[%c0_2, %c0_3, %c0_4] : memref<1x1x32xf32, #tpu.memory_space<vmem>>, vector<1x1x32xf32>
    %3 = vector.shape_cast %2 : vector<1x1x32xf32> to vector<1x32xf32>
    %c0_5 = arith.constant 0 : index
    %c0_6 = arith.constant 0 : index
    %4 = vector.load %arg4[%c0_5, %c0_6] : memref<32x128xf32, #tpu.memory_space<vmem>>, vector<32x128xf32>
    %cst = arith.constant dense<0.000000e+00> : vector<1x128xf32>
    %5 = tpu.matmul %1, %4, %cst {dimension_numbers = #tpu.dot_dimension_numbers<[1], [0], [0], [1], [0, 0, 1, 1], [], []>} : vector<1x32xf32>, vector<32x128xf32>, vector<1x128xf32> -> vector<1x128xf32>
    %c0_7 = arith.constant 0 : index
    %c0_8 = arith.constant 0 : index
    %6 = vector.load %arg5[%c0_7, %c0_8] : memref<32x128xf32, #tpu.memory_space<vmem>>, vector<32x128xf32>
    %cst_9 = arith.constant dense<0.000000e+00> : vector<1x128xf32>
    %7 = tpu.matmul %3, %6, %cst_9 {dimension_numbers = #tpu.dot_dimension_numbers<[1], [0], [0], [1], [0, 0, 1, 1], [], []>} : vector<1x32xf32>, vector<32x128xf32>, vector<1x128xf32> -> vector<1x128xf32>
    %8 = arith.addf %5, %7 : vector<1x128xf32>
    %c0_10 = arith.constant 0 : index
    %c0_11 = arith.constant 0 : index
    %9 = vector.load %arg6[%c0_10, %c0_11] : memref<1x128xf32, #tpu.memory_space<vmem>>, vector<1x128xf32>
    %10 = arith.addf %8, %9 : vector<1x128xf32>
    %cst_12 = arith.constant dense<0xFF800000> : vector<1xf32>
    %11 = vector.multi_reduction <maximumf>, %10, %cst_12 [1] : vector<1x128xf32> to vector<1xf32>
    %12 = vector.shape_cast %11 : vector<1xf32> to vector<1x1xf32>
    %13 = vector.broadcast %12 : vector<1x1xf32> to vector<1x128xf32>
    %14 = arith.subf %10, %13 : vector<1x128xf32>
    %15 = math.exp %14 : vector<1x128xf32>
    %cst_13 = arith.constant dense<0.000000e+00> : vector<1xf32>
    %16 = vector.multi_reduction <add>, %15, %cst_13 [1] : vector<1x128xf32> to vector<1xf32>
    %17 = vector.shape_cast %16 : vector<1xf32> to vector<1x1xf32>
    %18 = vector.broadcast %17 : vector<1x1xf32> to vector<1x128xf32>
    %19 = arith.divf %15, %18 : vector<1x128xf32>
    %c0_14 = arith.constant 0 : index
    %c0_15 = arith.constant 0 : index
    %c0_16 = arith.constant 0 : index
    %20 = vector.load %arg7[%c0_14, %c0_15, %c0_16] : memref<1x1x128xf32, #tpu.memory_space<vmem>>, vector<1x1x128xf32>
    %21 = vector.shape_cast %20 : vector<1x1x128xf32> to vector<1x128xf32>
    %22 = vector.shape_cast %19 : vector<1x128xf32> to vector<1x1x128xf32>
    tpu.vector_store %arg7[%c0_14, %c0_15, %c0_16], %22 {strides = array<i32>} : memref<1x1x128xf32, #tpu.memory_space<vmem>>, vector<1x1x128xf32>,
    return
  }
  func.func @transform_0(%arg0: i32, %arg1: memref<1xi32, #tpu.memory_space<smem>>) -> (i32, i32, i32) {
    %c0_i32 = arith.constant 0 : i32
    %c0_i32_0 = arith.constant 0 : i32
    %c0_i32_1 = arith.constant 0 : i32
    return %arg0, %c0_i32, %c0_i32_0 : i32, i32, i32
  }
  func.func @transform_1(%arg0: i32, %arg1: memref<1xi32, #tpu.memory_space<smem>>) -> (i32, i32, i32) {
    %0 = arith.index_cast %arg0 : i32 to index
    %1 = memref.load %arg1[%0] : memref<1xi32, #tpu.memory_space<smem>>
    %c0_i32 = arith.constant 0 : i32
    %c0_i32_0 = arith.constant 0 : i32
    %c0_i32_1 = arith.constant 0 : i32
    return %1, %c0_i32, %c0_i32_0 : i32, i32, i32
  }
  func.func @transform_2(%arg0: i32, %arg1: memref<1xi32, #tpu.memory_space<smem>>) -> (i32, i32) {
    %c0_i32 = arith.constant 0 : i32
    %c0_i32_0 = arith.constant 0 : i32
    %c0_i32_1 = arith.constant 0 : i32
    return %c0_i32, %c0_i32_0 : i32, i32
  }
  func.func @transform_3(%arg0: i32, %arg1: memref<1xi32, #tpu.memory_space<smem>>) -> (i32, i32) {
    %c0_i32 = arith.constant 0 : i32
    %c0_i32_0 = arith.constant 0 : i32
    %c0_i32_1 = arith.constant 0 : i32
    return %c0_i32, %c0_i32_0 : i32, i32
  }
  func.func @transform_4(%arg0: i32, %arg1: memref<1xi32, #tpu.memory_space<smem>>) -> (i32, i32) {
    %c0_i32 = arith.constant 0 : i32
    %c0_i32_0 = arith.constant 0 : i32
    %c0_i32_1 = arith.constant 0 : i32
    return %c0_i32, %c0_i32_0 : i32, i32
  }
  func.func @transform_5(%arg0: i32, %arg1: memref<1xi32, #tpu.memory_space<smem>>) -> (i32, i32, i32) {
    %c0_i32 = arith.constant 0 : i32
    %c0_i32_0 = arith.constant 0 : i32
    %c0_i32_1 = arith.constant 0 : i32
    return %arg0, %c0_i32, %c0_i32_0 : i32, i32, i32
  }
}

</mosaic_0001>

<bundles_post_ra>
// kernel: tpu_custom_call.1
= control target key start
LH: loop header
LB: loop body
LE: loop exit
PB: predicated region body
PF: predicated region fallthrough
CT: control target
= control target key end

     0   :  { %12 = vsyncpa [#allocation5], 0  ;;  %s357_s0 = inlined_call_operand.<no memory space> [shape: s32[1], index: 0, kind: input, shape index: {}]   ;;  %s358_s1 = inlined_call_operand.vmem [shape: f32[1,1,32], index: 1, kind: input, shape index: {}]   ;;  %s359_s2 = inlined_call_operand.hbm [shape: f32[8,1,32], index: 2, kind: input, shape index: {}]   ;;  %s360_s3 = inlined_call_operand.hbm [shape: f32[32,128], index: 3, kind: input, shape index: {}]   ;;  %s361_s4 = inlined_call_operand.hbm [shape: f32[32,128], index: 4, kind: input, shape index: {}]   ;;  %s362_s5 = inlined_call_operand.vmem [shape: f32[1,128], index: 5, kind: input, shape index: {}]   ;;  %s363_s6 = inlined_call_operand.hbm [shape: f32[1,1,128], index: 6, kind: output, shape index: {}]  }
   0x1   :  { %13 = vsyncpa [#allocation8], 0  ;;  %s34_s23 = sshll.u32 %s360_s3, 4  ;;  %s35_s23 = int_to_ptr.hbm [resolvable:$true] %s34_s23 }
   0x2   :  { %14 = vsyncpa [#allocation6], 0  ;;  %s289_s24 = smov [#allocation7]   ;;  %s22_s30 = scalar_lea.hbm %s359_s2, %s357_s0 }
   0x3   :  { %s36_s25 = sshll.u32 %s289_s24, 4  ;;  %s290_s7 = smov 128   ;;  %s37_s25 = int_to_ptr.vmem [resolvable:$true] %s36_s25 }
   0x4   :  { %s291_s8 = smov 8   ;;  %s24_s9 = sshll.u32 %s22_s30, 4  ;;  %s25_s9 = int_to_ptr.hbm [resolvable:$true] %s24_s9 }
   0x5   :  { %42 = dma.hbm_to_vmem [thread:$0]  %s35_s23, 512, %s37_s25, [#allocation8], %s290_s7, %s290_s7, %s291_s8  }
   0x6   :  { %s292_s10 = smov [#allocation4]   ;;  %s47_s13 = sshll.u32 %s361_s4, 4  ;;  %s48_s13 = int_to_ptr.hbm [resolvable:$true] %s47_s13 }
   0x7   :  { %s26_s11 = sshll.u32 %s292_s10, 4  ;;  %s211_s14 = sshra.s32 %s25_s9, 4  ;;  %s27_s11 = int_to_ptr.vmem [resolvable:$true] %s26_s11  ;;  %s212_s14 = int_to_ptr.hbm [resolvable:$true] %s211_s14 }
   0x8   :  { %s213_s15 = scalar_lea.hbm %s212_s14, 1  ;;  %s215_s0 = scalar_lea.hbm %s359_s2, 8 }
   0x9   :  { %p214_p0 = scmp.ne.s32.totalorder %s212_s14, %s213_s15  ;;  %p216_p1 = scmp.lt.s32.totalorder %s212_s14, %s359_s2 }
   0xa   :  { %p217_p2 = scmp.lt.s32.totalorder %s215_s0, %s213_s15 }
   0xc   :  { %p218_p3 = por %p217_p2, %p216_p1 }
   0xe   :  { %p219_p4 = pnand %p218_p3, %p214_p0 }
  0x10   :  { %222 = shalt.err (!%p219_p4)
}
  0x11   :  { %29 = dma.hbm_to_vmem [thread:$0]  %s25_s9, 16, %s27_s11, [#allocation5]  }
  0x12   :  { %s293_s20 = smov [#allocation9]  }
  0x13   :  { %s49_s4 = sshll.u32 %s293_s20, 4  ;;  %s50_s4 = int_to_ptr.vmem [resolvable:$true] %s49_s4 }
  0x14   :  { %55 = dma.hbm_to_vmem [thread:$0]  %s48_s13, 512, %s50_s4, [#allocation8], %s290_s7, %s290_s7, %s291_s8  }
  0x15   :  { %283 = dma.done.wait [#allocation5], 16  }
  0x16   :  { %284 = vsyncadd [#allocation5], 4294967280 }
  0x17   :  { %285 = dma.done.wait [#allocation8], 1024  }
  0x18   :  { %286 = vsyncadd [#allocation8], 4294966272  ;;  %v80_v0 = vld [vmem:[#allocation9 + $0x18] sm:$0xff]  ;;  %v79_v2 = vld [vmem:[#allocation9 + $0x10] sm:$0xff]  ;;  %vm81_vm0 = vcmask 261120   ;;  %vm130_vm1 = vcmask 1040384  }
  0x19   :  { %v76_v1 = vld [vmem:[#allocation7 + $0x18] sm:$0xff]  ;;  %97 = vmatpush.msra.mxu0 %v80_v0  ;;  %v75_v3 = vld [vmem:[#allocation7 + $0x10] sm:$0xff]  ;;  %v78_v4 = vld [vmem:[#allocation9 + $0x8] sm:$0xff]  ;;  %s163_s26 = sshll.u32 %s363_s6, 4  ;;  %s164_s26 = int_to_ptr.hbm [resolvable:$true] %s163_s26 }
  0x1a   :  { %120 = vmatpush.msra.mxu1 %v76_v1  ;;  %v74_v5 = vld [vmem:[#allocation7 + $0x8] sm:$0xff]  ;;  %v77_v6 = vld [vmem:[#allocation9] sm:$0xff]  ;;  %v72_v8 = vld [vmem:[#allocation4] sm:$0x1] }
  0x1b   :  { %98 = vmatpush.msra.mxu0 %v79_v2  ;;  %v73_v7 = vld [vmem:[#allocation7] sm:$0xff]  ;;  %v71_v9 = vld [vmem:[%s358_s1] sm:$0x1]  ;;  %s294_s1 = smov [#allocation10]  }
  0x1c   :  { %121 = vmatpush.msra.mxu1 %v75_v3  ;;  %v128_v12 = vld [vmem:[%s362_s5] sm:$0x1]  ;;  %s161_s5 = sshll.u32 %s294_s1, 4  ;;  %s162_s5 = int_to_ptr.vmem [resolvable:$true] %s161_s5 }
  0x1d   :  { %99 = vmatpush.msra.mxu0 %v78_v4 }
  0x1e   :  { %122 = vmatpush.msra.mxu1 %v74_v5 }
  0x1f   :  { %100 = vmatpush.msra.mxu0 %v77_v6 }
  0x20   :  { %123 = vmatpush.msra.mxu1 %v73_v7  ;;  %175 = vmatmul.msk.f32.vlgmr.msra.gmra.mxu0 %vm81_vm0, %v72_v8 }
  0x21   :  { %176 = vmatmul.msk.f32.vlgmr.msra.gmra.mxu1 %vm81_vm0, %v71_v9 }
  0x9d   :  { %v102_v10 = vpop.f32.mrf.mxu0 }
  0x9e   :  { %v125_v11 = vpop.f32.mrf.mxu1 }
  0x9f   :  { %v126_v13 = vadd.f32 %v125_v11, %v102_v10 }
  0xa1   :  { %v129_v14 = vadd.f32 %v128_v12, %v126_v13 }
  0xa3   :  { %v131_v15 = vsel %vm130_vm1, %v129_v14, -inf }
  0xa4   :  { %132 = vmax.xlane.f32.xlu0 %v131_v15 }
 0x117   :  { %v133_v16 = vpop.xlane.xlu0 %132 }
 0x118   :  { %v134_v17 = vsub.f32 %v129_v14, %v133_v16 }
 0x11a   :  { %v135_v18 = vmul.f32 1.442695, %v134_v17 }
 0x11c   :  { %183 = vpow2.f32 %v135_v18 }
 0x122   :  { %v184_v19 = vpop.eup %183 }
 0x123   :  { %v137_v20 = vsel %vm130_vm1, %v184_v19, 0.0 }
 0x124   :  { %138 = vadd.xlane.f32.xlu0 %v137_v20 }
 0x197   :  { %v139_v21 = vpop.xlane.xlu0 %138 }
 0x198   :  { %185 = vrcp.f32 %v139_v21  ;;  %v151_v25 = vand.u32 2147483648, %v139_v21  ;;  %v149_v27 = vand.u32 2147483647, %v139_v21  ;;  %vm145_vm3 = vweird.f32 %v139_v21 }
 0x19a   :  { %v152_v29 = vor.u32 1.1754944e-38, %v151_v25  ;;  %vm150_vm5 = vcmp.eq.f32.partialorder %v149_v27, 8.507059e+37 }
 0x19e   :  { %v186_v22 = vpop.eup %185 }
 0x19f   :  { %v141_v23 = vmul.f32 %v186_v22, %v139_v21  ;;  %vm146_vm2 = vweird.f32 %v186_v22 }
 0x1a0   :  { %vm147_vm4 = vmor %vm145_vm3, %vm146_vm2 }
 0x1a1   :  { %v142_v24 = vsub.f32 1.0, %v141_v23 }
 0x1a3   :  { %v143_v26 = vmul.f32 %v186_v22, %v142_v24 }
 0x1a5   :  { %v144_v28 = vadd.f32 %v186_v22, %v143_v26 }
 0x1a7   :  { %v148_v30 = vsel %vm147_vm4, %v186_v22, %v144_v28 }
 0x1a8   :  { %v153_v31 = vsel %vm150_vm5, %v152_v29, %v148_v30 }
 0x1a9   :  { %v154_v32 = vmul.f32 %v184_v19, %v153_v31 }
 0x1ab   :  { %155 = vst [vmem:[#allocation10] sm:$0x1] %v154_v32 }
 0x1ac   :  { %166 = dma.vmem_to_hbm [thread:$0]  %s162_s5, 16, %s164_s26, [#allocation6]  }
 0x1ad   :  { %287 = dma.done.wait [#allocation6], 16  }
 0x1ae   :  { %288 = vsyncadd [#allocation6], 4294967280 }
 0x1af   :  { %171 = vsyncpa [#allocation5], 1 }
 0x1b0   :  { %172 = vsyncpa [#allocation8], 1 }
 0x1b1   :  { %173 = vsyncpa [#allocation6], 1 }

</bundles_post_ra>
